<compile_context>
chip_gen: v6e
topology: v6e:2x2x1
jax: 0.10.0
libtpu: 0.0.40
codegen_flags: <defaults>
</compile_context>

<pallas_src>
import numpy as np
import jax
import jax.numpy as jnp
from jax import lax
from jax.experimental import pallas as pl
from jax.experimental.pallas import tpu as pltpu


def make_kernel(k):
    """Same construction as the PyTorch make_kernel (outer product + normalize)."""
    k = np.asarray(k, dtype=np.float32)
    if k.ndim == 1:
        k = k[None, :] * k[:, None]
    k = k / k.sum()
    return k


def _choose_bc(nc, h, w, h_pad, w_pad, h_out, w_out, in_bytes, out_bytes):
    """Pick a channel-batch size BC (divisor of nc) that fits VMEM comfortably."""
    # Per-plane VMEM footprint: double-buffered in/out tiles + f32 padded scratch.
    per_plane = (2 * h * w * in_bytes
                 + 2 * h_out * w_out * out_bytes
                 + 4 * h_pad * w_pad)
    budget = 12 * 1024 * 1024          # conservative; fits default scoped VMEM on v5e/v6e/v7x
    cap = max(1, budget // max(per_plane, 1))
    cap = min(cap, 32)                 # amortization saturates; keep many grid steps
    # Prefer >= 2 grid steps so v7x's two TensorCores both get work.
    target = cap if nc < 2 else min(cap, max(1, nc // 2))
    for bc in range(int(target), 0, -1):
        if nc % bc == 0:
            return bc
    return 1


def _build_blur_body(kernel_2d, k1, H, W, pad0, H_out, W_out):
    """Kernel body with FIR taps baked in as constants.

    upfirdn2d flips the kernel before conv2d (true convolution), so the
    flipped taps are used here to match exactly.
    """
    kh, kw = kernel_2d.shape
    kflip = kernel_2d[::-1, ::-1]
    if k1 is not None:
        taps_h = [float(v) for v in k1[::-1]]   # vertical (H) 1D taps, flipped
        taps_w = [float(v) for v in k1[::-1]]   # horizontal (W) 1D taps, flipped

    def body(x_ref, o_ref, xpad_ref):
        # x_ref: (BC, H, W) unpadded tile; xpad_ref: (BC, H_pad, W_pad) f32 scratch.
        xpad_ref[...] = jnp.zeros_like(xpad_ref)
        # Single cast to f32, single interior store: padding is fused in-kernel.
        xpad_ref[:, pad0:pad0 + H, pad0:pad0 + W] = x_ref[...].astype(jnp.float32)
        xp = xpad_ref[...]

        if k1 is not None:
            # Separable path: horizontal (lane-shift) pass, then vertical pass.
            acc_h = None
            for j, t in enumerate(taps_w):
                if t == 0.0:
                    continue
                term = t * xp[:, :, j:j + W_out]
                acc_h = term if acc_h is None else acc_h + term
            acc = None
            for i, t in enumerate(taps_h):
                if t == 0.0:
                    continue
                term = t * acc_h[:, i:i + H_out, :]
                acc = term if acc is None else acc + term
        else:
            # General (non-separable) 2D fallback.
            acc = None
            for i in range(kh):
                for j in range(kw):
                    t = float(kflip[i, j])
                    if t == 0.0:
                        continue
                    term = t * xp[:, i:i + H_out, j:j + W_out]
                    acc = term if acc is None else acc + term

        if acc is None:
            acc = jnp.zeros((x_ref.shape[0], H_out, W_out), jnp.float32)
        o_ref[...] = acc.astype(o_ref.dtype)   # single (accumulate-in-registers) store

    return body


class Blur:
    """JAX/Pallas port of the antialiasing Blur module (upfirdn2d, up=down=1)."""

    def __init__(self, kernel, pad, upsample_factor=1):
        k = np.asarray(kernel, dtype=np.float32)
        if k.ndim == 1:
            k1 = k / k.sum()
            if upsample_factor > 1:
                k1 = k1 * float(upsample_factor)
            self.k1 = k1                       # separable 1D factor (incl. sqrt of uf**2 scale)
            self.kernel = np.outer(k1, k1)     # == make_kernel(kernel) * uf**2
        else:
            k2 = k / k.sum()
            if upsample_factor > 1:
                k2 = k2 * float(upsample_factor ** 2)
            self.k1 = None
            self.kernel = k2
        self.pad = pad                         # (pad0, pad1), applied to both H and W

    def __call__(self, x):
        N, C, H, W = x.shape
        pad0, pad1 = self.pad
        kh, kw = self.kernel.shape

        # TODO(synk): negative pads (the cropping branch of upfirdn2d) not handled;
        # StyleGAN2's Blur only uses pad >= 0.
        H_pad = H + pad0 + pad1
        W_pad = W + pad0 + pad1
        H_out = H_pad - kh + 1
        W_out = W_pad - kw + 1

        NC = N * C
        xr = x.reshape(NC, H, W)

        dt_bytes = x.dtype.itemsize
        BC = _choose_bc(NC, H, W, H_pad, W_pad, H_out, W_out, dt_bytes, dt_bytes)

        body = _build_blur_body(self.kernel, self.k1, H, W, pad0, H_out, W_out)

        # Block shapes keep the full (H, W) spatial extent (satisfies the
        # "(8,128)-or-full-dim" constraint for any H, W) and tile channels.
        out = pl.pallas_call(
            body,
            out_shape=jax.ShapeDtypeStruct((NC, H_out, W_out), x.dtype),
            grid=(NC // BC,),
            in_specs=[pl.BlockSpec((BC, H, W), lambda n: (n, 0, 0))],
            out_specs=pl.BlockSpec((BC, H_out, W_out), lambda n: (n, 0, 0)),
            scratch_shapes=[pltpu.VMEM((BC, H_pad, W_pad), jnp.float32)],
            compiler_params=pltpu.CompilerParams(
                dimension_semantics=("parallel",)),
        )(xr)
        return out.reshape(N, C, H_out, W_out)


def _reference_blur(x, kernel_2d, pad):
    """Pure-JAX reference: depthwise true-convolution with zero padding."""
    N, C, H, W = x.shape
    pad0, pad1 = pad
    kh, kw = kernel_2d.shape
    w = jnp.asarray(kernel_2d[::-1, ::-1], dtype=jnp.float32)   # flip -> true conv
    w = jnp.broadcast_to(w[None, None], (C, 1, kh, kw))
    return lax.conv_general_dilated(
        x.astype(jnp.float32), w,
        window_strides=(1, 1),
        padding=((pad0, pad1), (pad0, pad1)),
        dimension_numbers=("NCHW", "OIHW", "NCHW"),
        feature_group_count=C,
    ).astype(x.dtype)


if __name__ == "__main__":
    key = jax.random.PRNGKey(0)
    N, C, H, W = 2, 4, 16, 16
    x = jax.random.normal(key, (N, C, H, W), dtype=jnp.float32)

    blur = Blur(kernel=[1, 3, 3, 1], pad=(2, 1), upsample_factor=1)

    out = blur(x)
    out = jax.block_until_ready(out)

    ref = _reference_blur(x, blur.kernel, blur.pad)
    assert out.shape == ref.shape, (out.shape, ref.shape)
    np.testing.assert_allclose(np.asarray(out), np.asarray(ref),
                               rtol=1e-5, atol=1e-5)

    print("KERNEL_OK")
</pallas_src>

<mosaic_0001>
module attributes {stable_mosaic.version = 11 : i64} {
  func.func @body(%arg0: i32, %arg1: memref<4x16x16xf32, #tpu.memory_space<vmem>>, %arg2: memref<4x16x16xf32, #tpu.memory_space<vmem>>, %arg3: memref<4x19x19xf32, #tpu.memory_space<vmem>>) attributes {dimension_semantics = [#tpu.dimension_semantics<parallel>], iteration_bounds = array<i64: 2>, scalar_prefetch = 0 : i64, scratch_operands = 1 : i64, tpu.core_type = #tpu.core_type<tc>, window_params = [{transform_indices = @transform_0, window_bounds = array<i64: 4, 16, 16>}, {transform_indices = @transform_1, window_bounds = array<i64: 4, 16, 16>}]} {
    %cst = arith.constant 0.000000e+00 : f32
    %0 = vector.broadcast %cst : f32 to vector<4x19x19xf32>
    %c0 = arith.constant 0 : index
    %c0_0 = arith.constant 0 : index
    %c0_1 = arith.constant 0 : index
    %1 = vector.load %arg3[%c0, %c0_0, %c0_1] : memref<4x19x19xf32, #tpu.memory_space<vmem>>, vector<4x19x19xf32>
    tpu.vector_store %arg3[%c0, %c0_0, %c0_1], %0 {strides = array<i32>} : memref<4x19x19xf32, #tpu.memory_space<vmem>>, vector<4x19x19xf32>,
    %c0_2 = arith.constant 0 : index
    %c0_3 = arith.constant 0 : index
    %c0_4 = arith.constant 0 : index
    %2 = vector.load %arg1[%c0_2, %c0_3, %c0_4] : memref<4x16x16xf32, #tpu.memory_space<vmem>>, vector<4x16x16xf32>
    %c0_5 = arith.constant 0 : index
    %c2 = arith.constant 2 : index
    %c2_6 = arith.constant 2 : index
    %3 = vector.load %arg3[%c0_5, %c2, %c2_6] : memref<4x19x19xf32, #tpu.memory_space<vmem>>, vector<4x16x16xf32>
    tpu.vector_store %arg3[%c0_5, %c2, %c2_6], %2 {strides = array<i32>} : memref<4x19x19xf32, #tpu.memory_space<vmem>>, vector<4x16x16xf32>,
    %c0_7 = arith.constant 0 : index
    %c0_8 = arith.constant 0 : index
    %c0_9 = arith.constant 0 : index
    %4 = vector.load %arg3[%c0_7, %c0_8, %c0_9] : memref<4x19x19xf32, #tpu.memory_space<vmem>>, vector<4x19x19xf32>
    %5 = vector.extract_strided_slice %4 {offsets = [0, 0, 0], sizes = [4, 19, 16], strides = [1, 1, 1]} : vector<4x19x19xf32> to vector<4x19x16xf32>
    %cst_10 = arith.constant 1.250000e-01 : f32
    %6 = vector.broadcast %cst_10 : f32 to vector<4x19x16xf32>
    %7 = arith.mulf %6, %5 : vector<4x19x16xf32>
    %8 = vector.extract_strided_slice %4 {offsets = [0, 0, 1], sizes = [4, 19, 16], strides = [1, 1, 1]} : vector<4x19x19xf32> to vector<4x19x16xf32>
    %cst_11 = arith.constant 3.750000e-01 : f32
    %9 = vector.broadcast %cst_11 : f32 to vector<4x19x16xf32>
    %10 = arith.mulf %9, %8 : vector<4x19x16xf32>
    %11 = arith.addf %7, %10 : vector<4x19x16xf32>
    %12 = vector.extract_strided_slice %4 {offsets = [0, 0, 2], sizes = [4, 19, 16], strides = [1, 1, 1]} : vector<4x19x19xf32> to vector<4x19x16xf32>
    %cst_12 = arith.constant 3.750000e-01 : f32
    %13 = vector.broadcast %cst_12 : f32 to vector<4x19x16xf32>
    %14 = arith.mulf %13, %12 : vector<4x19x16xf32>
    %15 = arith.addf %11, %14 : vector<4x19x16xf32>
    %16 = vector.extract_strided_slice %4 {offsets = [0, 0, 3], sizes = [4, 19, 16], strides = [1, 1, 1]} : vector<4x19x19xf32> to vector<4x19x16xf32>
    %cst_13 = arith.constant 1.250000e-01 : f32
    %17 = vector.broadcast %cst_13 : f32 to vector<4x19x16xf32>
    %18 = arith.mulf %17, %16 : vector<4x19x16xf32>
    %19 = arith.addf %15, %18 : vector<4x19x16xf32>
    %20 = vector.extract_strided_slice %19 {offsets = [0, 0, 0], sizes = [4, 16, 16], strides = [1, 1, 1]} : vector<4x19x16xf32> to vector<4x16x16xf32>
    %cst_14 = arith.constant 1.250000e-01 : f32
    %21 = vector.broadcast %cst_14 : f32 to vector<4x16x16xf32>
    %22 = arith.mulf %21, %20 : vector<4x16x16xf32>
    %23 = vector.extract_strided_slice %19 {offsets = [0, 1, 0], sizes = [4, 16, 16], strides = [1, 1, 1]} : vector<4x19x16xf32> to vector<4x16x16xf32>
    %cst_15 = arith.constant 3.750000e-01 : f32
    %24 = vector.broadcast %cst_15 : f32 to vector<4x16x16xf32>
    %25 = arith.mulf %24, %23 : vector<4x16x16xf32>
    %26 = arith.addf %22, %25 : vector<4x16x16xf32>
    %27 = vector.extract_strided_slice %19 {offsets = [0, 2, 0], sizes = [4, 16, 16], strides = [1, 1, 1]} : vector<4x19x16xf32> to vector<4x16x16xf32>
    %cst_16 = arith.constant 3.750000e-01 : f32
    %28 = vector.broadcast %cst_16 : f32 to vector<4x16x16xf32>
    %29 = arith.mulf %28, %27 : vector<4x16x16xf32>
    %30 = arith.addf %26, %29 : vector<4x16x16xf32>
    %31 = vector.extract_strided_slice %19 {offsets = [0, 3, 0], sizes = [4, 16, 16], strides = [1, 1, 1]} : vector<4x19x16xf32> to vector<4x16x16xf32>
    %cst_17 = arith.constant 1.250000e-01 : f32
    %32 = vector.broadcast %cst_17 : f32 to vector<4x16x16xf32>
    %33 = arith.mulf %32, %31 : vector<4x16x16xf32>
    %34 = arith.addf %30, %33 : vector<4x16x16xf32>
    %c0_18 = arith.constant 0 : index
    %c0_19 = arith.constant 0 : index
    %c0_20 = arith.constant 0 : index
    %35 = vector.load %arg2[%c0_18, %c0_19, %c0_20] : memref<4x16x16xf32, #tpu.memory_space<vmem>>, vector<4x16x16xf32>
    tpu.vector_store %arg2[%c0_18, %c0_19, %c0_20], %34 {strides = array<i32>} : memref<4x16x16xf32, #tpu.memory_space<vmem>>, vector<4x16x16xf32>,
    return
  }
  func.func @transform_0(%arg0: i32) -> (i32, i32, i32) {
    %c0_i32 = arith.constant 0 : i32
    %c0_i32_0 = arith.constant 0 : i32
    %c0_i32_1 = arith.constant 0 : i32
    return %arg0, %c0_i32, %c0_i32_0 : i32, i32, i32
  }
  func.func @transform_1(%arg0: i32) -> (i32, i32, i32) {
    %c0_i32 = arith.constant 0 : i32
    %c0_i32_0 = arith.constant 0 : i32
    %c0_i32_1 = arith.constant 0 : i32
    return %arg0, %c0_i32, %c0_i32_0 : i32, i32, i32
  }
}

</mosaic_0001>

<bundles_post_ra>
// kernel: tpu_custom_call.1
= control target key start
LH: loop header
LB: loop body
LE: loop exit
PB: predicated region body
PF: predicated region fallthrough
CT: control target
= control target key end

     0   :  { %6 = vsyncpa [#allocation4], 0  ;;  %s1100_s0 = inlined_call_operand.hbm [shape: f32[8,16,16], index: 0, kind: input, shape index: {}]   ;;  %s1101_s1 = inlined_call_operand.hbm [shape: f32[8,16,16], index: 1, kind: output, shape index: {}]  }
   0x1   :  { %8 = vsyncpa [#allocation4 + $0x1], 0 }
   0x2   :  { %9 = vsyncpa [#allocation5], 0 }
   0x3   :  { %11 = vsyncpa [#allocation5 + $0x1], 0  ;;  %s851_s6 = smov 0   ;;  %s853_s7 = smov 0  }
   0x4   :  { %s855_s8 = smov 0   ;;  %s857_s9 = smov 0  }
   0x5 LB: > { %s872_s10 = sadd.s32 4294967295, %s828_s9   ;;  %s661_s11 = sadd.s32 4294967294, %s828_s9   ;;  %s828_s9 = sphi %s857_s9, %s1116_s9   ;;  %s824_s8 = sphi %s855_s8, %s1115_s8   ;;  %s820_s7 = sphi %s853_s7, %s1114_s7   ;;  %s816_s6 = sphi %s851_s6, %s1113_s6  }
   0x6   : > { %s876_s12 = sadd.s32 1, %s828_s9   ;;  %s24_s13 = sadd.s32 1, %s824_s8 }
   0x7   : > { %s21_s14 = ssub.s32 %s828_s9, %s876_s12  ;;  %p31_p0 = scmp.ne.s32.totalorder %s824_s8, %s820_s7 }
   0x8   : > { %p22_p1 = scmp.eq.s32.totalorder %s21_s14, 0  ;;  %p32_p2 = scmp.eq.s32.totalorder %s828_s9, 0 }
   0x9   : > { %p37_p3 = scmp.ne.s32.totalorder %s820_s7, %s816_s6  ;;  %p38_p4 = scmp.eq.s32.totalorder %s872_s10, 0 }
   0xa   : > { %s888_s15 = scalar_select %p22_p1, %s824_s8, %s24_s13  }
   0xb   : > { %p890_p5 = por %p32_p2, %p31_p0  ;;  %p894_p6 = por %p38_p4, %p37_p3 }
   0xc   : > { %p61_p7 = scmp.eq.s32.totalorder %s872_s10, 1  ;;  %p67_p8 = scmp.eq.s32.totalorder %s661_s11, 1 }
   0xd   : > { %s1105_s17 = scalar_select %p894_p6, 1, 0 }
   0xe   : > { %p693_p10 = scmp.lt.s32.totalorder %s828_s9, 2  ;;  %p901_p11 = por %p61_p7, %p31_p0 }
   0xf   : > { %p905_p12 = por %p67_p8, %p37_p3  ;;  %s87_s20 = sand.u32 1, %s824_s8  }
  0x10   : > { %s1106_s18 = scalar_select %p901_p11, 1, 0 }
  0x11   : > { %s1107_s19 = scalar_select %p905_p12, 1, 0 }
  0x12   : > { %s678_s21 = sshll.u32 %s828_s9, 10  ;;  %s664_s22 = sshll.u32 %s87_s20, 6 }
  0x13   : > { %s914_s25 = scalar_lea.hbm %s1100_s0, %s678_s21  ;;  %s91_s26 = scalar_lea.vmem [#allocation3], %s664_s22 }
  0x14   : > { %s99_s27 = sshll.u32 %s91_s26, 4  ;;  %p918_p13 = pnand %p693_p10, %p890_p5  ;;  %s922_s27 = int_to_ptr.vmem [resolvable:$true] %s99_s27 }
  0x15   : > { %s924_s29 = scalar_lea.sflag [#allocation4], %s87_s20  ;;  %s736_s30 = scalar_lea.hbm %s914_s25, 1024 }
  0x16   : > { %p737_p0 = scmp.ne.s32.totalorder %s914_s25, %s736_s30  ;;  %p738_p1 = pneg %p918_p13 }
  0x17   : > { %s741_s4 = scalar_lea.hbm %s1100_s0, 2048  ;;  %p742_p4 = scmp.lt.s32.totalorder %s914_s25, %s1100_s0 }
  0x18   : > { %p739_p2 = pnand %p738_p1, %p737_p0  ;;  %p743_p5 = scmp.lt.s32.totalorder %s741_s4, %s736_s30 }
  0x1a   : > { %p740_p3 = pneg %p739_p2  ;;  %p744_p7 = por %p743_p5, %p742_p4 }
  0x1c   : > { %p745_p8 = pnand %p744_p7, %p740_p3 }
  0x1e   : > { %748 = shalt.err (!%p745_p8)
}
  0x1f   : > { %s749_s13 = scalar_lea.vmem %s922_s27, 1024  ;;  %s830_s14 = smov [#allocation3]  }
  0x20   : > { %p750_p10 = scmp.ne.s32.totalorder %s922_s27, %s749_s13  ;;  %s754_s16 = sshll.u32 %s830_s14, 4  ;;  %s755_s16 = int_to_ptr.vmem [resolvable:$false] %s754_s16 }
  0x21   : > { %s756_s20 = scalar_lea.vmem %s755_s16, 2048  ;;  %p757_p2 = scmp.lt.s32.totalorder %s922_s27, %s755_s16 }
  0x22   : > { %p752_p9 = pnand %p750_p10, %p738_p1  ;;  %p758_p12 = scmp.lt.s32.totalorder %s756_s20, %s749_s13 }
  0x24   : > { %p753_p0 = pneg %p752_p9  ;;  %p759_p11 = por %p758_p12, %p757_p2 }
  0x26   : > { %p760_p6 = pnand %p759_p11, %p753_p0 }
  0x28   : > { %763 = shalt.err (!%p760_p6)
}
  0x29   : > { %s831_s21 = smov 128   ;;  %s832_s22 = smov 8  }
  0x2a   : > { %688 = dma.hbm_to_vmem [thread:$0]  (!%p918_p13), %s914_s25, 1024, %s922_s27, %s924_s29, %s831_s21, %s831_s21, %s832_s22  }
  0x2b   : > { %p668_p9 = scmp.ge.s32.totalorder %s828_s9, 1  ;;  %p107_p1 = scmp.lt.s32.totalorder %s828_s9, 3 }
  0x2d   : > { %p108_p3 = pnand %p668_p9, %p107_p1 }
  0x2e   : > { %s948_s23 = sand.u32 (!%p108_p3), 1, %s820_s7   ;;  %p1109_p6 = scmp.ne.s32.totalorder (!%p108_p3), %s1105_s17, 0 }
  0x2f   : > { %111 = sbr.rel (%p108_p3) target bundleno = 397 (0x18d), region = 24  ;;  %s669_s24 = sshll.u32 (!%p108_p3), %s948_s23, 6 }
  0x30   : > { %s114_s26 = scalar_lea.sflag (!%p108_p3), [#allocation4], %s948_s23  ;;  %s954_s30 = scalar_lea.vmem (!%p108_p3), [#allocation3], %s669_s24 }
  0x34   : > { %807 = dma.done.wait (%p1109_p6), %s114_s26, 1024  }
  0x35   : > { %809 = vsyncadd (%p1109_p6), %s114_s26, 4294966272  ;;  %vm138_vm0 = vcmask 154624   ;;  %vm141_vm1 = vcmask 149504   ;;  %v833_v0 = vmov 0.0   ;;  %v152_v1 = vld [vmem:[%s954_s30] sm:$0xff]  ;;  %v154_v2 = vld [vmem:[%s954_s30 + $0x10] sm:$0xff] }
  0x36   : > { %139 = vst.msk [vmem:[#allocation2] sm:$0xff] %vm138_vm0, %v833_v0  ;;  %140 = vst.msk [vmem:[#allocation2 + $0x8] sm:$0xff] %vm138_vm0, %v833_v0  ;;  %s834_s17 = smov 2   ;;  %v153_v3 = vld [vmem:[%s954_s30 + $0x8] sm:$0xff]  ;;  %v155_v4 = vld [vmem:[%s954_s30 + $0x18] sm:$0xff]  ;;  %vm192_vm2 = vcmask 146448  }
  0x37   : > { %143 = vst.msk [vmem:[#allocation2 + $0x18] sm:$0xff] %vm138_vm0, %v833_v0  ;;  %144 = vst.msk [vmem:[#allocation2 + $0x20] sm:$0xff] %vm138_vm0, %v833_v0  ;;  %168 = vrot.lane.b32.xlu0 %v152_v1, %s834_s17  ;;  %172 = vrot.lane.b32.xlu1 %v154_v2, %s834_s17  ;;  %v156_v5 = vld [vmem:[%s954_s30 + $0x20] sm:$0xff]  ;;  %v157_v6 = vld [vmem:[%s954_s30 + $0x28] sm:$0xff]  ;;  %s835_s25 = smov 127   ;;  %s836_s27 = smov 126  }
  0x38   : > { %146 = vst.msk [vmem:[#allocation2 + $0x30] sm:$0xff] %vm138_vm0, %v833_v0  ;;  %147 = vst.msk [vmem:[#allocation2 + $0x38] sm:$0xff] %vm138_vm0, %v833_v0  ;;  %v159_v7 = vld [vmem:[%s954_s30 + $0x38] sm:$0xff]  ;;  %v158_v8 = vld [vmem:[%s954_s30 + $0x30] sm:$0xff]  ;;  %s837_s28 = smov 125   ;;  %vm437_vm3 = vcmask 1046528  }
  0x39   : > { %149 = vst.msk [vmem:[#allocation2 + $0x48] sm:$0xff] %vm138_vm0, %v833_v0  ;;  %150 = vst.msk [vmem:[#allocation2 + $0x50] sm:$0xff] %vm138_vm0, %v833_v0  ;;  %vm474_vm4 = vcmask 1045504   ;;  %vm527_vm5 = vcmask 1044480   ;;  %vm564_vm6 = vcmask 130048   ;;  %s1011_s29 = scalar_lea.vmem [#allocation6], %s669_s24 }
  0x3a   : > { %142 = vst.msk [vmem:[#allocation2 + $0x10] sm:$0x7] %vm141_vm1, %v833_v0  ;;  %145 = vst.msk [vmem:[#allocation2 + $0x28] sm:$0x7] %vm141_vm1, %v833_v0  ;;  %s680_s2 = sshll.u32 %s872_s10, 10  ;;  %s588_s3 = sshll.u32 %s1011_s29, 4  ;;  %s1053_s3 = int_to_ptr.vmem [resolvable:$true] %s588_s3 }
  0x3b   : > { %148 = vst.msk [vmem:[#allocation2 + $0x40] sm:$0x7] %vm141_vm1, %v833_v0  ;;  %151 = vst.msk [vmem:[#allocation2 + $0x58] sm:$0x7] %vm141_vm1, %v833_v0  ;;  %170 = vrot.lane.b32.xlu0 %v153_v3, %s834_s17  ;;  %174 = vrot.lane.b32.xlu1 %v155_v4, %s834_s17  ;;  %s1051_s11 = scalar_lea.hbm %s1101_s1, %s680_s2  ;;  %s574_s10 = scalar_lea.sflag [#allocation5], %s948_s23 }
  0x3c   : > { %s764_s13 = scalar_lea.vmem %s1053_s3, 1024  ;;  %p1110_p12 = scmp.ne.s32.totalorder %s1106_s18, 0 }
  0x3d   : > { %p765_p11 = scmp.ne.s32.totalorder %s1053_s3, %s764_s13  ;;  %s838_s14 = smov [#allocation6]  }
  0x3e   : > { %s768_s16 = sshll.u32 %s838_s14, 4  ;;  %s769_s16 = int_to_ptr.vmem [resolvable:$false] %s768_s16 }
  0x3f   : > { %176 = vrot.lane.b32.xlu0 %v156_v5, %s834_s17  ;;  %178 = vrot.lane.b32.xlu1 %v157_v6, %s834_s17  ;;  %p766_p13 = pnand %p765_p11, %p1110_p12  ;;  %s770_s20 = scalar_lea.vmem %s769_s16, 2048 }
  0x40   : > { %p771_p5 = scmp.lt.s32.totalorder %s1053_s3, %s769_s16  ;;  %p772_p7 = scmp.lt.s32.totalorder %s770_s20, %s764_s13 }
  0x41   : > { %p767_p4 = pneg %p766_p13 }
  0x42   : > { %p773_p8 = por %p772_p7, %p771_p5 }
  0x43   : > { %182 = vrot.lane.b32.xlu1 %v159_v7, %s834_s17  ;;  %180 = vrot.lane.b32.xlu0 %v158_v8, %s834_s17 }
  0x44   : > { %p774_p10 = pnand %p773_p8, %p767_p4 }
  0xa9   : > { %v169_v9 = vpop.permute.xlu0 %168  ;;  %v173_v10 = vpop.permute.xlu1 %172 }
  0xaa   : > { %193 = vst.msk [vmem:[#allocation2 + $0x2] sm:$0xff] %vm192_vm2, %v169_v9  ;;  %195 = vst.msk [vmem:[#allocation2 + $0x1a] sm:$0xff] %vm192_vm2, %v173_v10 }
  0xad   : > { %v171_v11 = vpop.permute.xlu0 %170  ;;  %v175_v12 = vpop.permute.xlu1 %174 }
  0xae   : > { %194 = vst.msk [vmem:[#allocation2 + $0xa] sm:$0xff] %vm192_vm2, %v171_v11  ;;  %196 = vst.msk [vmem:[#allocation2 + $0x22] sm:$0xff] %vm192_vm2, %v175_v12 }
  0xb1   : > { %v201_v13 = vld [vmem:[#allocation2] sm:$0xff]  ;;  %v177_v14 = vpop.permute.xlu0 %176  ;;  %v179_v15 = vpop.permute.xlu1 %178  ;;  %v204_v17 = vld [vmem:[#allocation2 + $0x18] sm:$0xff] }
  0xb2   : > { %v225_v16 = vmul.f32 0.375, %v201_v13  ;;  %197 = vst.msk [vmem:[#allocation2 + $0x32] sm:$0xff] %vm192_vm2, %v177_v14  ;;  %198 = vst.msk [vmem:[#allocation2 + $0x3a] sm:$0xff] %vm192_vm2, %v179_v15  ;;  %v228_v25 = vmul.f32 0.375, %v204_v17  ;;  %v213_v41 = vmul.f32 0.125, %v201_v13  ;;  %v216_v44 = vmul.f32 0.125, %v204_v17 }
  0xb4   : > { %249 = vrot.lane.b32.xlu0 %v225_v16, %s835_s25 }
  0xb5   : > { %v202_v18 = vld [vmem:[#allocation2 + $0x8] sm:$0xff]  ;;  %v203_v19 = vld [vmem:[#allocation2 + $0x10] sm:$0x7]  ;;  %v205_v20 = vld [vmem:[#allocation2 + $0x20] sm:$0xff]  ;;  %v183_v21 = vpop.permute.xlu1 %182  ;;  %v181_v22 = vpop.permute.xlu0 %180 }
  0xb6   : > { %v226_v23 = vmul.f32 0.375, %v202_v18  ;;  %v227_v24 = vmul.f32 0.375, %v203_v19  ;;  %200 = vst.msk [vmem:[#allocation2 + $0x52] sm:$0xff] %vm192_vm2, %v183_v21  ;;  %199 = vst.msk [vmem:[#allocation2 + $0x4a] sm:$0xff] %vm192_vm2, %v181_v22  ;;  %v229_v26 = vmul.f32 0.375, %v205_v20  ;;  %v214_v42 = vmul.f32 0.125, %v202_v18 }
  0xb7   : > { %v206_v27 = vld [vmem:[#allocation2 + $0x28] sm:$0x7]  ;;  %v215_v43 = vmul.f32 0.125, %v203_v19  ;;  %v217_v45 = vmul.f32 0.125, %v205_v20 }
  0xb8   : > { %251 = vrot.lane.b32.xlu1 %v226_v23, %s835_s25  ;;  %253 = vrot.lane.b32.xlu0 %v227_v24, %s835_s25  ;;  %v230_v29 = vmul.f32 0.375, %v206_v27  ;;  %v218_v46 = vmul.f32 0.125, %v206_v27 }
  0xb9   : > { %v207_v28 = vld [vmem:[#allocation2 + $0x30] sm:$0xff]  ;;  %v208_v31 = vld [vmem:[#allocation2 + $0x38] sm:$0xff]  ;;  %v209_v32 = vld [vmem:[#allocation2 + $0x40] sm:$0x7] }
  0xba   : > { %v231_v30 = vmul.f32 0.375, %v207_v28  ;;  %v232_v33 = vmul.f32 0.375, %v208_v31  ;;  %v233_v34 = vmul.f32 0.375, %v209_v32  ;;  %v219_v47 = vmul.f32 0.125, %v207_v28 }
  0xbb   : > { %v220_v48 = vmul.f32 0.125, %v208_v31  ;;  %v221_v49 = vmul.f32 0.125, %v209_v32 }
  0xbc   : > { %255 = vrot.lane.b32.xlu1 %v228_v25, %s835_s25  ;;  %257 = vrot.lane.b32.xlu0 %v229_v26, %s835_s25 }
  0xbd   : > { %v210_v35 = vld [vmem:[#allocation2 + $0x48] sm:$0xff]  ;;  %v211_v36 = vld [vmem:[#allocation2 + $0x50] sm:$0xff]  ;;  %v212_v39 = vld [vmem:[#allocation2 + $0x58] sm:$0x7] }
  0xbe   : > { %v234_v37 = vmul.f32 0.375, %v210_v35  ;;  %v235_v38 = vmul.f32 0.375, %v211_v36  ;;  %v236_v40 = vmul.f32 0.375, %v212_v39  ;;  %v222_v50 = vmul.f32 0.125, %v210_v35 }
  0xbf   : > { %v223_v51 = vmul.f32 0.125, %v211_v36  ;;  %v224_v52 = vmul.f32 0.125, %v212_v39 }
  0xc0   : > { %259 = vrot.lane.b32.xlu1 %v230_v29, %s835_s25  ;;  %261 = vrot.lane.b32.xlu0 %v231_v30, %s835_s25 }
  0xc4   : > { %263 = vrot.lane.b32.xlu1 %v232_v33, %s835_s25  ;;  %265 = vrot.lane.b32.xlu0 %v233_v34, %s835_s25 }
  0xc8   : > { %267 = vrot.lane.b32.xlu1 %v234_v37, %s835_s25  ;;  %269 = vrot.lane.b32.xlu0 %v235_v38, %s835_s25 }
  0xcc   : > { %271 = vrot.lane.b32.xlu1 %v236_v40, %s835_s25  ;;  %297 = vrot.lane.b32.xlu0 %v225_v16, %s836_s27 }
  0xd0   : > { %299 = vrot.lane.b32.xlu1 %v226_v23, %s836_s27  ;;  %301 = vrot.lane.b32.xlu0 %v227_v24, %s836_s27 }
  0xd4   : > { %303 = vrot.lane.b32.xlu1 %v228_v25, %s836_s27  ;;  %305 = vrot.lane.b32.xlu0 %v229_v26, %s836_s27 }
  0xd8   : > { %307 = vrot.lane.b32.xlu1 %v230_v29, %s836_s27  ;;  %309 = vrot.lane.b32.xlu0 %v231_v30, %s836_s27 }
  0xdc   : > { %311 = vrot.lane.b32.xlu1 %v232_v33, %s836_s27  ;;  %313 = vrot.lane.b32.xlu0 %v233_v34, %s836_s27 }
  0xe0   : > { %315 = vrot.lane.b32.xlu1 %v234_v37, %s836_s27  ;;  %317 = vrot.lane.b32.xlu0 %v235_v38, %s836_s27 }
  0xe4   : > { %319 = vrot.lane.b32.xlu1 %v236_v40, %s836_s27  ;;  %357 = vrot.lane.b32.xlu0 %v213_v41, %s837_s28 }
  0xe8   : > { %359 = vrot.lane.b32.xlu1 %v214_v42, %s837_s28  ;;  %361 = vrot.lane.b32.xlu0 %v215_v43, %s837_s28 }
  0xec   : > { %363 = vrot.lane.b32.xlu1 %v216_v44, %s837_s28  ;;  %365 = vrot.lane.b32.xlu0 %v217_v45, %s837_s28 }
  0xf0   : > { %367 = vrot.lane.b32.xlu1 %v218_v46, %s837_s28  ;;  %369 = vrot.lane.b32.xlu0 %v219_v47, %s837_s28 }
  0xf4   : > { %371 = vrot.lane.b32.xlu1 %v220_v48, %s837_s28  ;;  %373 = vrot.lane.b32.xlu0 %v221_v49, %s837_s28 }
  0xf8   : > { %375 = vrot.lane.b32.xlu1 %v222_v50, %s837_s28  ;;  %377 = vrot.lane.b32.xlu0 %v223_v51, %s837_s28 }
  0xfc   : > { %379 = vrot.lane.b32.xlu1 %v224_v52, %s837_s28 }
 0x126   : > { %v250_v53 = vpop.permute.xlu0 %249 }
 0x127   : > { %v285_v12 = vadd.f32 %v250_v53, %v213_v41 }
 0x12a   : > { %v252_v54 = vpop.permute.xlu1 %251  ;;  %v254_v55 = vpop.permute.xlu0 %253 }
 0x12b   : > { %v286_v16 = vadd.f32 %v252_v54, %v214_v42  ;;  %v287_v18 = vadd.f32 %v254_v55, %v215_v43 }
 0x12e   : > { %v256_v56 = vpop.permute.xlu1 %255  ;;  %v258_v57 = vpop.permute.xlu0 %257 }
 0x12f   : > { %v288_v19 = vadd.f32 %v256_v56, %v216_v44  ;;  %v289_v20 = vadd.f32 %v258_v57, %v217_v45 }
 0x132   : > { %v260_v58 = vpop.permute.xlu1 %259  ;;  %v262_v59 = vpop.permute.xlu0 %261 }
 0x133   : > { %v290_v21 = vadd.f32 %v260_v58, %v218_v46  ;;  %v291_v22 = vadd.f32 %v262_v59, %v219_v47 }
 0x136   : > { %v264_v60 = vpop.permute.xlu1 %263  ;;  %v266_v61 = vpop.permute.xlu0 %265 }
 0x137   : > { %v292_v23 = vadd.f32 %v264_v60, %v220_v48  ;;  %v293_v26 = vadd.f32 %v266_v61, %v221_v49 }
 0x13a   : > { %v268_v62 = vpop.permute.xlu1 %267  ;;  %v270_v63 = vpop.permute.xlu0 %269 }
 0x13b   : > { %v294_v27 = vadd.f32 %v268_v62, %v222_v50  ;;  %v295_v32 = vadd.f32 %v270_v63, %v223_v51 }
 0x13e   : > { %v272_v0 = vpop.permute.xlu1 %271  ;;  %v298_v1 = vpop.permute.xlu0 %297 }
 0x13f   : > { %v333_v13 = vadd.f32 %v298_v1, %v285_v12  ;;  %v996_v33 = vadd.f32 %v272_v0, %v224_v52 }
 0x142   : > { %v300_v2 = vpop.permute.xlu1 %299  ;;  %v302_v3 = vpop.permute.xlu0 %301 }
 0x143   : > { %v334_v24 = vadd.f32 %v300_v2, %v286_v16  ;;  %v335_v28 = vadd.f32 %v302_v3, %v287_v18 }
 0x146   : > { %v304_v4 = vpop.permute.xlu1 %303  ;;  %v306_v5 = vpop.permute.xlu0 %305 }
 0x147   : > { %v336_v34 = vadd.f32 %v304_v4, %v288_v19  ;;  %v337_v36 = vadd.f32 %v306_v5, %v289_v20 }
 0x14a   : > { %v308_v6 = vpop.permute.xlu1 %307  ;;  %v310_v7 = vpop.permute.xlu0 %309 }
 0x14b   : > { %v338_v37 = vadd.f32 %v308_v6, %v290_v21  ;;  %v339_v38 = vadd.f32 %v310_v7, %v291_v22 }
 0x14e   : > { %v312_v8 = vpop.permute.xlu1 %311  ;;  %v988_v9 = vpop.permute.xlu0 %313 }
 0x14f   : > { %v998_v40 = vadd.f32 %v312_v8, %v292_v23 }
 0x152   : > { %v990_v10 = vpop.permute.xlu1 %315  ;;  %v992_v11 = vpop.permute.xlu0 %317 }
 0x156   : > { %v994_v14 = vpop.permute.xlu1 %319  ;;  %v358_v15 = vpop.permute.xlu0 %357 }
 0x157   : > { %v393_v17 = vadd.f32 %v358_v15, %v333_v13 }
 0x159   : > { %v413_v25 = vmul.f32 0.375, %v393_v17  ;;  %v405_v29 = vmul.f32 0.125, %v393_v17 }
 0x15a   : > { %v360_v30 = vpop.permute.xlu1 %359  ;;  %v362_v31 = vpop.permute.xlu0 %361 }
 0x15b   : > { %v394_v35 = vadd.f32 %v360_v30, %v334_v24  ;;  %v395_v39 = vadd.f32 %v362_v31, %v335_v28  ;;  %v438_v41 = vrot.slane %v413_v25, 1  ;;  %v475_v44 = vrot.slane %v413_v25, 2 }
 0x15c   : > { %v528_v45 = vrot.slane %v405_v29, 3  ;;  %v341_v25 = vadd.f32 %v988_v9, %v293_v26  ;;  %v342_v28 = vadd.f32 %v990_v10, %v294_v27 }
 0x15d   : > { %v406_v42 = vmul.f32 0.125, %v394_v35  ;;  %v414_v43 = vmul.f32 0.375, %v394_v35  ;;  %v415_v46 = vmul.f32 0.375, %v395_v39  ;;  %v511_v47 = vmul.f32 0.125, %v395_v39 }
 0x15e   : > { %v364_v48 = vpop.permute.xlu1 %363  ;;  %v366_v49 = vpop.permute.xlu0 %365 }
 0x15f   : > { %v439_v50 = vrot.slane %v414_v43, 1  ;;  %v476_v51 = vrot.slane %v414_v43, 2  ;;  %v529_v52 = vrot.slane %v406_v42, 3  ;;  %v396_v53 = vadd.f32 %v364_v48, %v336_v34 }
 0x160   : > { %v441_v54 = vrot.slane %v415_v46, 1  ;;  %v478_v55 = vrot.slane %v415_v46, 2  ;;  %v531_v56 = vrot.slane %v511_v47, 3  ;;  %v397_v57 = vadd.f32 %v366_v49, %v337_v36 }
 0x161   : > { %v440_v58 = vsel %vm437_vm3, %v438_v41, %v439_v50  ;;  %v477_v59 = vsel %vm474_vm4, %v475_v44, %v476_v51  ;;  %v530_v60 = vsel %vm527_vm5, %v528_v45, %v529_v52  ;;  %v407_v61 = vmul.f32 0.125, %v396_v53 }
 0x162   : > { %v466_v62 = vadd.f32 %v440_v58, %v405_v29  ;;  %v442_v63 = vsel %vm437_vm3, %v439_v50, %v441_v54  ;;  %v479_v0 = vsel %vm474_vm4, %v476_v51, %v478_v55  ;;  %v532_v1 = vsel %vm527_vm5, %v529_v52, %v531_v56  ;;  %v368_v2 = vpop.permute.xlu1 %367  ;;  %v370_v3 = vpop.permute.xlu0 %369 }
 0x163   : > { %v467_v4 = vadd.f32 %v442_v63, %v406_v42  ;;  %v416_v5 = vmul.f32 0.375, %v396_v53  ;;  %v533_v6 = vrot.slane %v407_v61, 3  ;;  %v408_v7 = vmul.f32 0.125, %v397_v57 }
 0x164   : > { %v503_v8 = vadd.f32 %v477_v59, %v466_v62  ;;  %v417_v12 = vmul.f32 0.375, %v397_v57  ;;  %v398_v13 = vadd.f32 %v368_v2, %v338_v37  ;;  %v399_v15 = vadd.f32 %v370_v3, %v339_v38 }
 0x165   : > { %v504_v16 = vadd.f32 %v479_v0, %v467_v4  ;;  %v443_v17 = vrot.slane %v416_v5, 1  ;;  %v480_v18 = vrot.slane %v416_v5, 2  ;;  %v534_v19 = vrot.slane %v408_v7, 3 }
 0x166   : > { %v556_v20 = vadd.f32 %v530_v60, %v503_v8  ;;  %v444_v21 = vrot.slane %v417_v12, 1  ;;  %v481_v22 = vrot.slane %v417_v12, 2  ;;  %v418_v23 = vmul.f32 0.375, %v398_v13  ;;  %v372_v24 = vpop.permute.xlu1 %371  ;;  %v374_v31 = vpop.permute.xlu0 %373 }
 0x167   : > { %v557_v29 = vadd.f32 %v532_v1, %v504_v16  ;;  %v512_v30 = vmul.f32 0.125, %v398_v13  ;;  %v343_v34 = vadd.f32 %v992_v11, %v295_v32  ;;  %v535_v10 = vsel %vm527_vm5, %v533_v6, %v534_v19 }
 0x168   : > { %565 = vst.msk [vmem:[%s1011_s29] sm:$0xff] %vm564_vm6, %v556_v20  ;;  %v445_v35 = vsel %vm437_vm3, %v443_v17, %v444_v21  ;;  %v446_v36 = vrot.slane %v418_v23, 1  ;;  %v483_v37 = vrot.slane %v418_v23, 2  ;;  %v419_v27 = vmul.f32 0.375, %v399_v15 }
 0x169   : > { %566 = vst.msk [vmem:[%s1011_s29 + $0x8] sm:$0xff] %vm564_vm6, %v557_v29  ;;  %v468_v9 = vadd.f32 %v445_v35, %v407_v61  ;;  %v536_v26 = vrot.slane %v512_v30, 3  ;;  %v482_v11 = vsel %vm474_vm4, %v480_v18, %v481_v22  ;;  %v400_v38 = vadd.f32 %v372_v24, %v998_v40 }
 0x16a   : > { %v447_v32 = vsel %vm437_vm3, %v444_v21, %v446_v36  ;;  %v401_v39 = vadd.f32 %v374_v31, %v341_v25  ;;  %v376_v41 = vpop.permute.xlu1 %375  ;;  %v484_v44 = vsel %vm474_vm4, %v481_v22, %v483_v37  ;;  %v409_v45 = vmul.f32 0.125, %v399_v15  ;;  %v378_v61 = vpop.permute.xlu0 %377 }
 0x16b   : > { %v505_v42 = vadd.f32 %v482_v11, %v468_v9  ;;  %v469_v43 = vadd.f32 %v447_v32, %v408_v7  ;;  %v537_v46 = vsel %vm527_vm5, %v534_v19, %v536_v26  ;;  %v410_v47 = vmul.f32 0.125, %v400_v38 }
 0x16c   : > { %v420_v48 = vmul.f32 0.375, %v400_v38  ;;  %v421_v49 = vmul.f32 0.375, %v401_v39  ;;  %v448_v52 = vrot.slane %v419_v27, 1  ;;  %v513_v53 = vmul.f32 0.125, %v401_v39 }
 0x16d   : > { %v558_v50 = vadd.f32 %v535_v10, %v505_v42  ;;  %v506_v51 = vadd.f32 %v484_v44, %v469_v43  ;;  %v402_v56 = vadd.f32 %v376_v41, %v342_v28  ;;  %v485_v58 = vrot.slane %v419_v27, 2 }
 0x16e   : > { %v449_v54 = vrot.slane %v420_v48, 1  ;;  %v486_v40 = vrot.slane %v420_v48, 2  ;;  %v451_v55 = vrot.slane %v421_v49, 1  ;;  %v539_v59 = vrot.slane %v410_v47, 3  ;;  %v380_v62 = vpop.permute.xlu1 %379 }
 0x16f   : > { %567 = vst.msk [vmem:[%s1011_s29 + $0x10] sm:$0xff] %vm564_vm6, %v558_v50  ;;  %v559_v57 = vadd.f32 %v537_v46, %v506_v51  ;;  %v488_v60 = vrot.slane %v421_v49, 2  ;;  %v344_v63 = vadd.f32 %v994_v14, %v996_v33  ;;  %v541_v2 = vrot.slane %v513_v53, 3 }
 0x170   : > { %v450_v0 = vsel %vm437_vm3, %v448_v52, %v449_v54  ;;  %v452_v1 = vsel %vm437_vm3, %v449_v54, %v451_v55  ;;  %v538_v3 = vrot.slane %v409_v45, 3  ;;  %v487_v5 = vsel %vm474_vm4, %v485_v58, %v486_v40 }
 0x171   : > { %568 = vst.msk [vmem:[%s1011_s29 + $0x18] sm:$0xff] %vm564_vm6, %v559_v57  ;;  %v470_v4 = vadd.f32 %v450_v0, %v409_v45  ;;  %v471_v6 = vadd.f32 %v452_v1, %v410_v47  ;;  %v489_v7 = vsel %vm474_vm4, %v486_v40, %v488_v60  ;;  %v422_v8 = vmul.f32 0.375, %v402_v56 }
 0x172   : > { %v403_v12 = vadd.f32 %v378_v61, %v343_v34  ;;  %v404_v13 = vadd.f32 %v380_v62, %v344_v63  ;;  %v540_v14 = vsel %vm527_vm5, %v538_v3, %v539_v59  ;;  %v411_v16 = vmul.f32 0.125, %v402_v56 }
 0x173   : > { %v507_v15 = vadd.f32 %v487_v5, %v470_v4  ;;  %v508_v33 = vadd.f32 %v489_v7, %v471_v6  ;;  %v542_v17 = vsel %vm527_vm5, %v539_v59, %v541_v2  ;;  %v453_v18 = vrot.slane %v422_v8, 1 }
 0x174   : > { %v412_v19 = vmul.f32 0.125, %v403_v12  ;;  %v423_v20 = vmul.f32 0.375, %v403_v12  ;;  %v424_v23 = vmul.f32 0.375, %v404_v13  ;;  %v514_v24 = vmul.f32 0.125, %v404_v13 }
 0x175   : > { %v560_v21 = vadd.f32 %v540_v14, %v507_v15  ;;  %v561_v22 = vadd.f32 %v542_v17, %v508_v33  ;;  %v490_v25 = vrot.slane %v422_v8, 2  ;;  %v543_v34 = vrot.slane %v411_v16, 3 }
 0x176   : > { %v454_v28 = vrot.slane %v423_v20, 1  ;;  %v491_v29 = vrot.slane %v423_v20, 2  ;;  %v456_v30 = vrot.slane %v424_v23, 1  ;;  %v493_v31 = vrot.slane %v424_v23, 2 }
 0x177   : > { %569 = vst.msk [vmem:[%s1011_s29 + $0x20] sm:$0xff] %vm564_vm6, %v560_v21  ;;  %570 = vst.msk [vmem:[%s1011_s29 + $0x28] sm:$0xff] %vm564_vm6, %v561_v22  ;;  %v544_v36 = vrot.slane %v412_v19, 3  ;;  %v546_v10 = vrot.slane %v514_v24, 3 }
 0x178   : > { %v455_v35 = vsel %vm437_vm3, %v453_v18, %v454_v28  ;;  %v457_v9 = vsel %vm437_vm3, %v454_v28, %v456_v30  ;;  %v492_v26 = vsel %vm474_vm4, %v490_v25, %v491_v29  ;;  %v494_v32 = vsel %vm474_vm4, %v491_v29, %v493_v31 }
 0x179   : > { %v472_v37 = vadd.f32 %v455_v35, %v411_v16  ;;  %v473_v27 = vadd.f32 %v457_v9, %v412_v19  ;;  %v545_v38 = vsel %vm527_vm5, %v543_v34, %v544_v36  ;;  %v547_v42 = vsel %vm527_vm5, %v544_v36, %v546_v10 }
 0x17b   : > { %v509_v11 = vadd.f32 %v492_v26, %v472_v37  ;;  %v510_v39 = vadd.f32 %v494_v32, %v473_v27 }
 0x17d   : > { %v562_v41 = vadd.f32 %v545_v38, %v509_v11  ;;  %v563_v43 = vadd.f32 %v547_v42, %v510_v39 }
 0x17f   : > { %571 = vst.msk [vmem:[%s1011_s29 + $0x30] sm:$0xff] %vm564_vm6, %v562_v41  ;;  %572 = vst.msk [vmem:[%s1011_s29 + $0x38] sm:$0xff] %vm564_vm6, %v563_v43 }
 0x180   : > { %777 = shalt.err (!%p774_p10)
}
 0x181   : > { %s778_s21 = scalar_lea.hbm %s1051_s11, 1024  ;;  %s782_s26 = scalar_lea.hbm %s1101_s1, 2048 }
 0x182   : > { %p779_p0 = scmp.ne.s32.totalorder %s1051_s11, %s778_s21  ;;  %p783_p1 = scmp.lt.s32.totalorder %s1051_s11, %s1101_s1 }
 0x183   : > { %p784_p3 = scmp.lt.s32.totalorder %s782_s26, %s778_s21 }
 0x184   : > { %p780_p2 = pnand %p779_p0, %p1110_p12 }
 0x185   : > { %p785_p6 = por %p784_p3, %p783_p1 }
 0x186   : > { %p781_p9 = pneg %p780_p2 }
 0x188   : > { %p786_p11 = pnand %p785_p6, %p781_p9 }
 0x18a   : > { %789 = shalt.err (!%p786_p11)
}
 0x18b   : > { %s839_s25 = smov 128   ;;  %s840_s27 = smov 8  }
 0x18c   : > { %683 = dma.vmem_to_hbm [thread:$0]  (%p1110_p12), %s1053_s3, 1024, %s1051_s11, %s574_s10, %s839_s25, %s839_s25, %s840_s27  }
 0x18d PF: > { %s603_s28 = sand.u32 1, %s816_s6   ;;  %p1111_p13 = scmp.ne.s32.totalorder %s1107_s19, 0 }
 0x18e   : > { %p1112_p4 = scmp.ge.s32.totalorder %s828_s9, 2  ;;  %s604_s29 = scalar_lea.sflag [#allocation5], %s603_s28 }
 0x190   : > { %p690_p5 = pnand %p1112_p4, %p1111_p13 }
 0x192   : > { %p691_p7 = pneg %p690_p5 }
 0x194   : > { %811 = dma.done.wait (%p691_p7), %s604_s29, 1024  }
 0x195   : > { %813 = vsyncadd (%p691_p7), %s604_s29, 4294966272  ;;  %p14_p8 = scmp.ge.s32.totalorder %s876_s12, 4   ;;  %s1113_s6 = smov %s820_s7 }
 0x196   : > { %s1114_s7 = smov %s824_s8  ;;  %s1115_s8 = smov %s888_s15 }
 0x197   : > { %s1116_s9 = smov %s876_s12  ;;  %16 = sbr.rel (!%p14_p8) target bundleno = 5 (0x5), region = 69 }
 0x19c   :  { %609 = vsyncpa [#allocation4], 1 }
 0x19d   :  { %611 = vsyncpa [#allocation4 + $0x1], 1 }
 0x19e   :  { %612 = vsyncpa [#allocation5], 1 }
 0x19f   :  { %614 = vsyncpa [#allocation5 + $0x1], 1 }

</bundles_post_ra>
